<compile_context>
chip_gen: v7x
topology: tpu7x:2x2x1
jax: 0.10.0
libtpu: 0.0.40
codegen_flags: <defaults>
</compile_context>

<pallas_src>
import numpy as np
import jax
import jax.numpy as jnp
from jax.experimental import pallas as pl
from jax.experimental.pallas import tpu as pltpu

# ---------------- small config consistent with the module ----------------
B = 2            # batch
L = 16           # sequence length
C = 32           # c_in (channels / d_model)
K = 3            # conv kernel size
L_OUT = (L + 2 * 1 - K) // 2 + 1   # MaxPool1d(k=3, s=2, p=1) output length -> 8
BN_EPS = 1e-5
NEG = -1e30      # effectively -inf for the maxpool left padding (post-ELU y > -1)


# ---------------- Pallas kernel: whole batch in one step ----------------
def conv_layer_kernel(x_ref, w_ref, b_ref, m_ref, sel_ref, o_ref):
    # --- Conv1d(k=3, padding=1, padding_mode='circular') as ONE fused MXU matmul ---
    # Per batch element, lane-concatenate the three circular taps
    # [x[(l-1) mod L] | x[l] | x[(l+1) mod L]]  (sublane rolls run on the XLU),
    # then stack the B elements along sublanes -> (B*L, 3C) so a single matmul with
    # M = B*L computes the conv (+ folded eval-mode BatchNorm) for the whole batch.
    rows = []
    for b in range(B):                                   # static, unrolled (B = 2)
        xb = x_ref[b]                                    # (L, C)
        rows.append(jnp.concatenate(
            [pltpu.roll(xb, 1, 0),                       # x[(l-1) mod L]   (tap k=0)
             xb,                                         # x[l]             (tap k=1)
             pltpu.roll(xb, L - 1, 0)],                  # x[(l+1) mod L]   (tap k=2)
            axis=-1))                                    # (L, 3C)
    xcat = jnp.concatenate(rows, axis=0)                 # (B*L, 3C)

    y = jnp.dot(xcat, w_ref[...], preferred_element_type=jnp.float32)
    y = y + b_ref[...]                                   # conv bias with BN folded in

    # --- ELU (alpha = 1), clamped so the discarded branch never produces inf ---
    y = jnp.where(y > 0.0, y, jnp.exp(jnp.minimum(y, 0.0)) - 1.0)

    # --- MaxPool1d(kernel_size=3, stride=2, padding=1) along the sequence axis ---
    # Output i covers rows {2i-1, 2i, 2i+1}; only even rows are ever sampled, so the
    # right pad is never used (L even) and the left pad only matters at l == 0 of each
    # batch element. The additive mask (0 / -1e30) handles that and simultaneously
    # kills the cross-batch / circular wrap of the flat roll.
    left = pltpu.roll(y, 1, 0) + m_ref[...]              # y[l-1] with left padding
    right = pltpu.roll(y, B * L - 1, 0)                  # y[l+1]
    s = jnp.maximum(jnp.maximum(left, y), right)         # (B*L, C)

    # stride-2 row selection as a tiny resident 0/1 matmul (no in-kernel iotas)
    o_ref[...] = jnp.dot(sel_ref[...], s, preferred_element_type=jnp.float32)


def conv_layer(x, w_taps, conv_bias, gamma, beta, mean, var):
    """x: (B, L, C) -> (B, L_OUT, C). Eval-mode BatchNorm folded into the conv."""
    # ---- host-side, one-time parameter folding (exact for running-stat BN) ----
    scale = gamma / jnp.sqrt(var + BN_EPS)               # (1, C), per output channel
    w_cat = (w_taps * scale).reshape(K * C, C)           # (3C, C): [w0; w1; w2], scaled
    b_fold = conv_bias * scale + beta - mean * scale     # (1, C)

    # ---- tiny resident constants: left-pad mask and stride-2 row selector ----
    mask = np.zeros((B * L, C), np.float32)
    mask[np.arange(B) * L, :] = NEG                      # rows l == 0 of each batch
    sel = np.zeros((B * L_OUT, B * L), np.float32)
    for b in range(B):
        sel[b * L_OUT + np.arange(L_OUT), b * L + 2 * np.arange(L_OUT)] = 1.0

    out = pl.pallas_call(
        conv_layer_kernel,
        out_shape=jax.ShapeDtypeStruct((B * L_OUT, C), jnp.float32),
        grid=(1,),                                        # single step: no per-batch grid overhead
        in_specs=[
            pl.BlockSpec((B, L, C), lambda i: (0, 0, 0)),         # x (whole batch)
            pl.BlockSpec((K * C, C), lambda i: (0, 0)),           # fused conv+BN weights
            pl.BlockSpec((1, C), lambda i: (0, 0)),               # fused bias
            pl.BlockSpec((B * L, C), lambda i: (0, 0)),           # maxpool left-pad mask
            pl.BlockSpec((B * L_OUT, B * L), lambda i: (0, 0)),   # stride-2 selector
        ],
        out_specs=pl.BlockSpec((B * L_OUT, C), lambda i: (0, 0)),
        compiler_params=pltpu.CompilerParams(dimension_semantics=("arbitrary",)),
    )(x, w_cat, b_fold, jnp.asarray(mask), jnp.asarray(sel))
    return out.reshape(B, L_OUT, C)


# ---------------- pure-JAX reference (raw, unfolded parameters) ----------------
def ref_conv_layer(x, w_taps, conv_bias, gamma, beta, mean, var):
    def one(xb):                                           # xb: (L, C)
        # circular conv via explicit circular padding + shifted windows
        xp = jnp.concatenate([xb[-1:], xb, xb[:1]], axis=0)          # (L+2, C)
        y = sum(xp[k:k + L] @ w_taps[k] for k in range(K)) + conv_bias
        # batchnorm (eval mode), ELU
        y = (y - mean) / jnp.sqrt(var + BN_EPS) * gamma + beta
        y = jnp.where(y > 0.0, y, jnp.exp(jnp.minimum(y, 0.0)) - 1.0)
        # maxpool k=3 s=2 p=1 (implicit -inf padding)
        yp = jnp.pad(y, ((1, 1), (0, 0)), constant_values=-jnp.inf)
        return jnp.stack(
            [jnp.max(yp[2 * i:2 * i + 3], axis=0) for i in range(L_OUT)], axis=0)
    return jax.vmap(one)(x)


# ---------------- deterministic parameter init ----------------
def init_params(key):
    kw, kb, kg, kbe, km, kv = jax.random.split(key, 6)
    # w_taps[k][ci, co] corresponds to torch Conv1d weight[co, ci, k]
    w_taps = jax.random.normal(kw, (K, C, C), jnp.float32) / np.sqrt(K * C)
    conv_bias = 0.02 * jax.random.normal(kb, (1, C), jnp.float32)
    gamma = 1.0 + 0.1 * jax.random.normal(kg, (1, C), jnp.float32)
    beta = 0.1 * jax.random.normal(kbe, (1, C), jnp.float32)
    mean = 0.1 * jax.random.normal(km, (1, C), jnp.float32)                      # running_mean
    var = 0.5 + 0.5 * jnp.abs(jax.random.normal(kv, (1, C), jnp.float32))        # running_var
    return w_taps, conv_bias, gamma, beta, mean, var


if __name__ == "__main__":
    key = jax.random.PRNGKey(0)
    kx, kp = jax.random.split(key)
    x = jax.random.normal(kx, (B, L, C), jnp.float32)
    w_taps, conv_bias, gamma, beta, mean, var = init_params(kp)

    out = jax.block_until_ready(conv_layer(x, w_taps, conv_bias, gamma, beta, mean, var))
    ref = jax.block_until_ready(ref_conv_layer(x, w_taps, conv_bias, gamma, beta, mean, var))

    assert out.shape == (B, L_OUT, C)
    np.testing.assert_allclose(np.asarray(out), np.asarray(ref), rtol=1e-4, atol=1e-4)
    print("KERNEL_OK")
</pallas_src>

<mosaic_0001>
module attributes {stable_mosaic.version = 11 : i64} {
  func.func @conv_layer_kernel(%arg0: i32, %arg1: memref<2x16x32xf32, #tpu.memory_space<vmem>>, %arg2: memref<96x32xf32, #tpu.memory_space<vmem>>, %arg3: memref<1x32xf32, #tpu.memory_space<vmem>>, %arg4: memref<32x32xf32, #tpu.memory_space<vmem>>, %arg5: memref<16x32xf32, #tpu.memory_space<vmem>>, %arg6: memref<16x32xf32, #tpu.memory_space<vmem>>) attributes {dimension_semantics = [#tpu.dimension_semantics<arbitrary>], iteration_bounds = array<i64: 1>, scalar_prefetch = 0 : i64, scratch_operands = 0 : i64, tpu.core_type = #tpu.core_type<tc>, window_params = [{pipeline_mode = #tpu.pipeline_mode<synchronous>, transform_indices = @transform_0, window_bounds = array<i64: 2, 16, 32>}, {pipeline_mode = #tpu.pipeline_mode<synchronous>, transform_indices = @transform_1, window_bounds = array<i64: 96, 32>}, {pipeline_mode = #tpu.pipeline_mode<synchronous>, transform_indices = @transform_2, window_bounds = array<i64: 1, 32>}, {pipeline_mode = #tpu.pipeline_mode<synchronous>, transform_indices = @transform_3, window_bounds = array<i64: 32, 32>}, {pipeline_mode = #tpu.pipeline_mode<synchronous>, transform_indices = @transform_4, window_bounds = array<i64: 16, 32>}, {pipeline_mode = #tpu.pipeline_mode<synchronous>, transform_indices = @transform_5, window_bounds = array<i64: 16, 32>}]} {
    %c0 = arith.constant 0 : index
    %c0_0 = arith.constant 0 : index
    %c0_1 = arith.constant 0 : index
    %0 = vector.load %arg1[%c0, %c0_0, %c0_1] : memref<2x16x32xf32, #tpu.memory_space<vmem>>, vector<1x16x32xf32>
    %1 = vector.shape_cast %0 : vector<1x16x32xf32> to vector<16x32xf32>
    %c1_i32 = arith.constant 1 : i32
    %2 = tpu.dynamic_rotate %1 by %c1_i32 dim 0 : vector<16x32xf32>, i32 -> vector<16x32xf32>
    %c15_i32 = arith.constant 15 : i32
    %3 = tpu.dynamic_rotate %1 by %c15_i32 dim 0 : vector<16x32xf32>, i32 -> vector<16x32xf32>
    %4 = tpu.concatenate %2, %1, %3 in 1 : vector<16x32xf32>, vector<16x32xf32>, vector<16x32xf32> -> vector<16x96xf32>
    %c1 = arith.constant 1 : index
    %c0_2 = arith.constant 0 : index
    %c0_3 = arith.constant 0 : index
    %5 = vector.load %arg1[%c1, %c0_2, %c0_3] : memref<2x16x32xf32, #tpu.memory_space<vmem>>, vector<1x16x32xf32>
    %6 = vector.shape_cast %5 : vector<1x16x32xf32> to vector<16x32xf32>
    %c1_i32_4 = arith.constant 1 : i32
    %7 = tpu.dynamic_rotate %6 by %c1_i32_4 dim 0 : vector<16x32xf32>, i32 -> vector<16x32xf32>
    %c15_i32_5 = arith.constant 15 : i32
    %8 = tpu.dynamic_rotate %6 by %c15_i32_5 dim 0 : vector<16x32xf32>, i32 -> vector<16x32xf32>
    %9 = tpu.concatenate %7, %6, %8 in 1 : vector<16x32xf32>, vector<16x32xf32>, vector<16x32xf32> -> vector<16x96xf32>
    %10 = tpu.concatenate %4, %9 in 0 : vector<16x96xf32>, vector<16x96xf32> -> vector<32x96xf32>
    %c0_6 = arith.constant 0 : index
    %c0_7 = arith.constant 0 : index
    %11 = vector.load %arg2[%c0_6, %c0_7] : memref<96x32xf32, #tpu.memory_space<vmem>>, vector<96x32xf32>
    %cst = arith.constant dense<0.000000e+00> : vector<32x32xf32>
    %12 = tpu.matmul %10, %11, %cst {dimension_numbers = #tpu.dot_dimension_numbers<[1], [0], [0], [1], [0, 0, 1, 1], [], []>} : vector<32x96xf32>, vector<96x32xf32>, vector<32x32xf32> -> vector<32x32xf32>
    %c0_8 = arith.constant 0 : index
    %c0_9 = arith.constant 0 : index
    %13 = vector.load %arg3[%c0_8, %c0_9] : memref<1x32xf32, #tpu.memory_space<vmem>>, vector<1x32xf32>
    %14 = vector.broadcast %13 : vector<1x32xf32> to vector<32x32xf32>
    %15 = arith.addf %12, %14 : vector<32x32xf32>
    %cst_10 = arith.constant 0.000000e+00 : f32
    %16 = vector.broadcast %cst_10 : f32 to vector<32x32xf32>
    %17 = arith.cmpf ogt, %15, %16 : vector<32x32xf32>
    %cst_11 = arith.constant 0.000000e+00 : f32
    %18 = vector.broadcast %cst_11 : f32 to vector<32x32xf32>
    %19 = arith.minimumf %15, %18 : vector<32x32xf32>
    %20 = math.exp %19 : vector<32x32xf32>
    %cst_12 = arith.constant 1.000000e+00 : f32
    %21 = vector.broadcast %cst_12 : f32 to vector<32x32xf32>
    %22 = arith.subf %20, %21 : vector<32x32xf32>
    %23 = arith.select %17, %15, %22 : vector<32x32xi1>, vector<32x32xf32>
    %c1_i32_13 = arith.constant 1 : i32
    %24 = tpu.dynamic_rotate %23 by %c1_i32_13 dim 0 : vector<32x32xf32>, i32 -> vector<32x32xf32>
    %c0_14 = arith.constant 0 : index
    %c0_15 = arith.constant 0 : index
    %25 = vector.load %arg4[%c0_14, %c0_15] : memref<32x32xf32, #tpu.memory_space<vmem>>, vector<32x32xf32>
    %26 = arith.addf %24, %25 : vector<32x32xf32>
    %c31_i32 = arith.constant 31 : i32
    %27 = tpu.dynamic_rotate %23 by %c31_i32 dim 0 : vector<32x32xf32>, i32 -> vector<32x32xf32>
    %28 = arith.maximumf %26, %23 : vector<32x32xf32>
    %29 = arith.maximumf %28, %27 : vector<32x32xf32>
    %c0_16 = arith.constant 0 : index
    %c0_17 = arith.constant 0 : index
    %30 = vector.load %arg5[%c0_16, %c0_17] : memref<16x32xf32, #tpu.memory_space<vmem>>, vector<16x32xf32>
    %cst_18 = arith.constant dense<0.000000e+00> : vector<16x32xf32>
    %31 = tpu.matmul %30, %29, %cst_18 {dimension_numbers = #tpu.dot_dimension_numbers<[1], [0], [0], [1], [0, 0, 1, 1], [], []>} : vector<16x32xf32>, vector<32x32xf32>, vector<16x32xf32> -> vector<16x32xf32>
    %c0_19 = arith.constant 0 : index
    %c0_20 = arith.constant 0 : index
    %32 = vector.load %arg6[%c0_19, %c0_20] : memref<16x32xf32, #tpu.memory_space<vmem>>, vector<16x32xf32>
    tpu.vector_store %arg6[%c0_19, %c0_20], %31 {strides = array<i32>} : memref<16x32xf32, #tpu.memory_space<vmem>>, vector<16x32xf32>,
    return
  }
  func.func @transform_0(%arg0: i32) -> (i32, i32, i32) {
    %c0_i32 = arith.constant 0 : i32
    %c0_i32_0 = arith.constant 0 : i32
    %c0_i32_1 = arith.constant 0 : i32
    %c0_i32_2 = arith.constant 0 : i32
    return %c0_i32, %c0_i32_0, %c0_i32_1 : i32, i32, i32
  }
  func.func @transform_1(%arg0: i32) -> (i32, i32) {
    %c0_i32 = arith.constant 0 : i32
    %c0_i32_0 = arith.constant 0 : i32
    %c0_i32_1 = arith.constant 0 : i32
    return %c0_i32, %c0_i32_0 : i32, i32
  }
  func.func @transform_2(%arg0: i32) -> (i32, i32) {
    %c0_i32 = arith.constant 0 : i32
    %c0_i32_0 = arith.constant 0 : i32
    %c0_i32_1 = arith.constant 0 : i32
    return %c0_i32, %c0_i32_0 : i32, i32
  }
  func.func @transform_3(%arg0: i32) -> (i32, i32) {
    %c0_i32 = arith.constant 0 : i32
    %c0_i32_0 = arith.constant 0 : i32
    %c0_i32_1 = arith.constant 0 : i32
    return %c0_i32, %c0_i32_0 : i32, i32
  }
  func.func @transform_4(%arg0: i32) -> (i32, i32) {
    %c0_i32 = arith.constant 0 : i32
    %c0_i32_0 = arith.constant 0 : i32
    %c0_i32_1 = arith.constant 0 : i32
    return %c0_i32, %c0_i32_0 : i32, i32
  }
  func.func @transform_5(%arg0: i32) -> (i32, i32) {
    %c0_i32 = arith.constant 0 : i32
    %c0_i32_0 = arith.constant 0 : i32
    %c0_i32_1 = arith.constant 0 : i32
    return %c0_i32, %c0_i32_0 : i32, i32
  }
}

</mosaic_0001>

<bundles_post_ra>
// kernel: tpu_custom_call.1
= control target key start
LH: loop header
LB: loop body
LE: loop exit
PB: predicated region body
PF: predicated region fallthrough
CT: control target
= control target key end

     0   :  { %v25_v2 = vlaneseq  ;;  %s507_s22 = smov 32   ;;  %s508_s13 = smov 64   ;;  %s683_s0 = inlined_call_operand.vmem [shape: f32[2,16,32], index: 0, kind: input, shape index: {}]   ;;  %s684_s1 = inlined_call_operand.vmem [shape: f32[96,32], index: 1, kind: input, shape index: {}]   ;;  %s685_s2 = inlined_call_operand.vmem [shape: f32[1,32], index: 2, kind: input, shape index: {}]   ;;  %s686_s3 = inlined_call_operand.vmem [shape: f32[32,32], index: 3, kind: input, shape index: {}]   ;;  %s687_s4 = inlined_call_operand.vmem [shape: f32[16,32], index: 4, kind: input, shape index: {}]   ;;  %s688_s5 = inlined_call_operand.hbm [shape: f32[16,32], index: 5, kind: output, shape index: {}]  }
   0x1   :  { %v21_v0 = vld [vmem:[%s683_s0] sm:$0xff]  ;;  %v22_v1 = vld [vmem:[%s683_s0 + $0x8] sm:$0xff]  ;;  %v362_v5 = vld [vmem:[%s683_s0 + $0x10] sm:$0xff] }
   0x2   :  { %37 = vrot.lane.b32.xlu0 %v21_v0, %s507_s22  ;;  %v30_v3 = vrot.slane %v21_v0, 1  ;;  %v31_v4 = vrot.slane %v22_v1, 1  ;;  %v88_v6 = vld [vmem:[%s684_s1] sm:$0xff]  ;;  %v23_v7 = vrot.slane %v21_v0, 7  ;;  %v24_v8 = vrot.slane %v22_v1, 7  ;;  %v363_v10 = vld [vmem:[%s683_s0 + $0x18] sm:$0xff] }
   0x3   :  { %v555_v9 = vshrl.u32 %v25_v2, 7  ;;  %v89_v11 = vld [vmem:[%s684_s1 + $0x8] sm:$0xff]  ;;  %v90_v12 = vld [vmem:[%s684_s1 + $0x10] sm:$0xff]  ;;  %v60_v13 = vrot.slane %v362_v5, 7  ;;  %v91_v15 = vld [vmem:[%s684_s1 + $0x18] sm:$0xff]  ;;  %v61_v16 = vrot.slane %v363_v10, 7 }
   0x4   :  { %v438_v14 = vpack.c.bf16 %v89_v11, %v88_v6  ;;  %v442_v17 = vpack.c.bf16 %v91_v15, %v90_v12  ;;  %v92_v19 = vld [vmem:[%s684_s1 + $0x20] sm:$0xff]  ;;  %v93_v20 = vld [vmem:[%s684_s1 + $0x28] sm:$0xff]  ;;  %v64_v21 = vrot.slane %v362_v5, 1  ;;  %v65_v22 = vrot.slane %v363_v10, 1 }
   0x5   :  { %vm32_vm0 = vcmp.lt.s32.totalorder %v555_v9, 7  ;;  %vm27_vm1 = vcmp.lt.s32.totalorder %v555_v9, 1 }
   0x6   :  { %39 = vrot.lane.b32.xlu0 %v22_v1, %s507_s22  ;;  %v33_v18 = vsel %vm32_vm0, %v30_v3, %v31_v4  ;;  %439 = vmatprep.subr.bf16.mxu0 %v438_v14  ;;  %v29_v23 = vsel %vm27_vm1, %v24_v8, %v23_v7 }
   0x7   :  { %45 = vrot.lane.b32.xlu1 %v33_v18, %s508_s13 }
   0x8   :  { %10 = vsyncpa [#allocation3], 0  ;;  %v34_v24 = vsel %vm32_vm0, %v31_v4, %v30_v3  ;;  %441 = vmatpush3.bf16.msra.mxu0 %v438_v14  ;;  %v28_v25 = vsel %vm27_vm1, %v23_v7, %v24_v8  ;;  %v63_v26 = vsel %vm27_vm1, %v61_v16, %v60_v13  ;;  %v62_v27 = vsel %vm27_vm1, %v60_v13, %v61_v16  ;;  %v94_v29 = vld [vmem:[%s684_s1 + $0x30] sm:$0xff]  ;;  %v95_v30 = vld [vmem:[%s684_s1 + $0x38] sm:$0xff]  ;;  %s509_s11 = smov [#allocation2]  }
   0x9   :  { %443 = vmatprep.subr.bf16.mxu0 %v442_v17  ;;  %v446_v28 = vpack.c.bf16 %v93_v20, %v92_v19  ;;  %v66_v31 = vsel %vm32_vm0, %v64_v21, %v65_v22  ;;  %v450_v32 = vpack.c.bf16 %v95_v30, %v94_v29  ;;  %v96_v33 = vld [vmem:[%s684_s1 + $0x40] sm:$0xff]  ;;  %v97_v34 = vld [vmem:[%s684_s1 + $0x48] sm:$0xff]  ;;  %v67_v35 = vsel %vm32_vm0, %v65_v22, %v64_v21  ;;  %v98_v37 = vld [vmem:[%s684_s1 + $0x50] sm:$0xff]  ;;  %s351_s12 = sshll.u32 %s509_s11, 4  ;;  %s352_s12 = int_to_ptr.vmem [resolvable:$true] %s351_s12 }
   0xa   :  { %70 = vrot.lane.b32.xlu0 %v362_v5, %s507_s22  ;;  %v454_v36 = vpack.c.bf16 %v97_v34, %v96_v33  ;;  %v99_v38 = vld [vmem:[%s684_s1 + $0x58] sm:$0xff]  ;;  %vm51_vm2 = vcmask 261120   ;;  %vm54_vm3 = vcmask 523264   ;;  %vm107_vm4 = vcmask 785408   ;;  %v261_v56 = vld [vmem:[%s687_s4] sm:$0xff]  ;;  %v238_v21 = vld [vmem:[%s686_s3 + $0x8] sm:$0xff]  ;;  %p488_p1 = scmp.lt.s32.totalorder %s352_s12, %s352_s12 }
   0xb   :  { %47 = vrot.lane.b32.xlu1 %v34_v24, %s508_s13  ;;  %v458_v39 = vpack.c.bf16 %v99_v38, %v98_v37  ;;  %435 = vmatprep.mubr.msk.f32.mxu1 %vm51_vm2, %v261_v56  ;;  %v364_v57 = vld [vmem:[%s685_s2] ss:$0 sm:$0xff]  ;;  %v240_v38 = vld [vmem:[%s686_s3 + $0x18] sm:$0xff] }
   0xc   :  { %445 = vmatpush3.bf16.msra.mxu0 %v442_v17  ;;  %v237_v34 = vld [vmem:[%s686_s3] sm:$0xff] }
   0xd   :  { %447 = vmatprep.subr.bf16.mxu0 %v446_v28 }
   0xe   :  { %78 = vrot.lane.b32.xlu0 %v66_v31, %s508_s13 }
   0xf   :  { %72 = vrot.lane.b32.xlu1 %v363_v10, %s507_s22 }
  0x10   :  { %449 = vmatpush3.bf16.msra.mxu0 %v446_v28 }
  0x11   :  { %451 = vmatprep.subr.bf16.mxu0 %v450_v32 }
  0x13   :  { %80 = vrot.lane.b32.xlu1 %v67_v35, %s508_s13  ;;  %s483_s13 = scalar_lea.vmem %s352_s12, 256 }
  0x14   :  { %453 = vmatpush3.bf16.msra.mxu0 %v450_v32  ;;  %p484_p0 = scmp.ne.s32.totalorder %s352_s12, %s483_s13  ;;  %p489_p2 = scmp.lt.s32.totalorder %s483_s13, %s483_s13 }
  0x15   :  { %455 = vmatprep.subr.bf16.mxu0 %v454_v36 }
  0x16   :  { %p490_p3 = por %p489_p2, %p488_p1 }
  0x18   :  { %457 = vmatpush3.bf16.msra.mxu0 %v454_v36  ;;  %v239_v36 = vld [vmem:[%s686_s3 + $0x10] sm:$0xff]  ;;  %p491_p4 = pnand %p490_p3, %p484_p0 }
  0x19   :  { %459 = vmatprep.subr.bf16.mxu0 %v458_v39 }
  0x1c   :  { %461 = vmatpush3.bf16.msra.mxu0 %v458_v39 }
  0x74   :  { %v38_v40 = vpop.permute.xlu0 %37 }
  0x75   :  { %v52_v41 = vsel %vm51_vm2, %v29_v23, %v38_v40 }
  0x78   :  { %v40_v42 = vpop.permute.xlu0 %39 }
  0x79   :  { %v46_v43 = vpop.permute.xlu1 %45  ;;  %v53_v45 = vsel %vm51_vm2, %v28_v25, %v40_v42 }
  0x7a   :  { %v55_v44 = vsel %vm54_vm3, %v52_v41, %v46_v43 }
  0x7b   :  { %421 = vmatprep.mubr.msk.f32.mxu0 %vm107_vm4, %v55_v44 }
  0x7c   :  { %v71_v46 = vpop.permute.xlu0 %70 }
  0x7d   :  { %v48_v47 = vpop.permute.xlu1 %47  ;;  %v84_v48 = vsel %vm51_vm2, %v63_v26, %v71_v46 }
  0x7e   :  { %v56_v49 = vsel %vm54_vm3, %v53_v45, %v48_v47 }
  0x7f   :  { %422 = vmatmul.mubr.msk.f32.vlgmr.msra.gmra.mrb[0].mxu0 %vm107_vm4, %v56_v49 }
  0x80   :  { %v79_v50 = vpop.permute.xlu0 %78 }
  0x81   :  { %v86_v51 = vsel %vm54_vm3, %v84_v48, %v79_v50  ;;  %v73_v52 = vpop.permute.xlu1 %72 }
  0x82   :  { %424 = vmatprep.mubr.msk.f32.mxu0 %vm107_vm4, %v86_v51  ;;  %v85_v53 = vsel %vm51_vm2, %v62_v27, %v73_v52 }
  0x85   :  { %v81_v54 = vpop.permute.xlu1 %80 }
  0x86   :  { %v87_v55 = vsel %vm54_vm3, %v85_v53, %v81_v54 }
  0x87   :  { %425 = vmatmul.mubr.msk.f32.gmra.mrb[2].mxu0 %vm107_vm4, %v87_v55 }
 0x152   :  { %v423_v58 = vpop.f32.mrb[0].mxu0 }
 0x153   :  { %v192_v59 = vadd.f32 %v423_v58, %v364_v57  ;;  %v186_v60 = vpop.f32.mrb[1].mxu0 }
 0x154   :  { %v187_v61 = vadd.f32 %v364_v57, %v186_v60 }
 0x155   :  { %v210_v62 = vmin.f32 %v192_v59, 0.0  ;;  %vm206_vm5 = vcmp.gt.f32.partialorder %v192_v59, 0.0 }
 0x156   :  { %v209_v63 = vmin.f32 %v187_v61, 0.0  ;;  %vm205_vm6 = vcmp.gt.f32.partialorder %v187_v61, 0.0 }
 0x157   :  { %v215_v0 = vmul.f32 1.442695, %v210_v62 }
 0x158   :  { %v213_v1 = vmul.f32 1.442695, %v209_v63 }
 0x159   :  { %475 = vpow2.f32 %v215_v0 }
 0x15a   :  { %477 = vpow2.f32 %v213_v1  ;;  %v426_v2 = vpop.f32.mrb[2].mxu0 }
 0x15b   :  { %v202_v3 = vadd.f32 %v426_v2, %v364_v57  ;;  %v196_v4 = vpop.f32.mrb[3].mxu0 }
 0x15c   :  { %v197_v5 = vadd.f32 %v364_v57, %v196_v4  ;;  %v262_v57 = vld [vmem:[%s687_s4 + $0x8] sm:$0xff] }
 0x15d   :  { %v212_v6 = vmin.f32 %v202_v3, 0.0  ;;  %vm208_vm7 = vcmp.gt.f32.partialorder %v202_v3, 0.0 }
 0x15e   :  { %v211_v7 = vmin.f32 %v197_v5, 0.0  ;;  %vm207_vm8 = vcmp.gt.f32.partialorder %v197_v5, 0.0 }
 0x15f   :  { %v219_v8 = vmul.f32 1.442695, %v212_v6 }
 0x160   :  { %v217_v10 = vmul.f32 1.442695, %v211_v7 }
 0x161   :  { %479 = vpow2.f32 %v219_v8 }
 0x162   :  { %481 = vpow2.f32 %v217_v10 }
 0x163   :  { %v476_v11 = vpop.eup %475 }
 0x164   :  { %v478_v12 = vpop.eup %477  ;;  %v370_v13 = vadd.f32 -1.0, %v476_v11 }
 0x165   :  { %v369_v14 = vadd.f32 -1.0, %v478_v12 }
 0x166   :  { %v226_v15 = vsel %vm206_vm5, %v192_v59, %v370_v13 }
 0x167   :  { %v230_v16 = vrot.slane %v226_v15, 7  ;;  %v246_v17 = vrot.slane %v226_v15, 1  ;;  %v225_v18 = vsel %vm205_vm6, %v187_v61, %v369_v14 }
 0x168   :  { %v229_v19 = vrot.slane %v225_v18, 7  ;;  %v245_v20 = vrot.slane %v225_v18, 1 }
 0x16a   :  { %v235_v22 = vsel %vm27_vm1, %v229_v19, %v230_v16  ;;  %v251_v23 = vsel %vm32_vm0, %v245_v20, %v246_v17 }
 0x16b   :  { %v480_v24 = vpop.eup %479  ;;  %v242_v25 = vadd.f32 %v238_v21, %v235_v22 }
 0x16c   :  { %v482_v26 = vpop.eup %481  ;;  %v372_v27 = vadd.f32 -1.0, %v480_v24 }
 0x16d   :  { %v371_v28 = vadd.f32 -1.0, %v482_v26  ;;  %v254_v29 = vmax.f32 %v242_v25, %v226_v15 }
 0x16e   :  { %v228_v30 = vsel %vm208_vm7, %v202_v3, %v372_v27 }
 0x16f   :  { %v232_v31 = vrot.slane %v228_v30, 7  ;;  %v248_v32 = vrot.slane %v228_v30, 1  ;;  %v227_v33 = vsel %vm207_vm8, %v197_v5, %v371_v28 }
 0x170   :  { %v231_v35 = vrot.slane %v227_v33, 7  ;;  %v247_v37 = vrot.slane %v227_v33, 1 }
 0x171   :  { %v236_v39 = vsel %vm27_vm1, %v232_v31, %v229_v19  ;;  %v252_v40 = vsel %vm32_vm0, %v248_v32, %v245_v20 }
 0x172   :  { %v234_v41 = vsel %vm27_vm1, %v230_v16, %v231_v35  ;;  %v241_v42 = vadd.f32 %v237_v34, %v236_v39  ;;  %v250_v43 = vsel %vm32_vm0, %v246_v17, %v247_v37  ;;  %v233_v44 = vsel %vm27_vm1, %v231_v35, %v232_v31 }
 0x173   :  { %v243_v45 = vadd.f32 %v239_v36, %v234_v41  ;;  %v258_v46 = vmax.f32 %v254_v29, %v250_v43  ;;  %v244_v47 = vadd.f32 %v240_v38, %v233_v44  ;;  %v249_v48 = vsel %vm32_vm0, %v247_v37, %v248_v32 }
 0x174   :  { %v253_v49 = vmax.f32 %v241_v42, %v225_v18 }
 0x175   :  { %v255_v50 = vmax.f32 %v243_v45, %v227_v33  ;;  %v256_v51 = vmax.f32 %v244_v47, %v228_v30 }
 0x176   :  { %v257_v52 = vmax.f32 %v253_v49, %v251_v23 }
 0x177   :  { %v259_v53 = vmax.f32 %v255_v50, %v249_v48  ;;  %v260_v54 = vmax.f32 %v256_v51, %v252_v40 }
 0x178   :  { %v462_v55 = vpack.c.bf16 %v258_v46, %v257_v52 }
 0x179   :  { %v466_v56 = vpack.c.bf16 %v260_v54, %v259_v53 }
 0x17a   :  { %463 = vmatprep.subr.bf16.mxu1 %v462_v55 }
 0x17b   :  { %465 = vmatpush3.bf16.msra.mxu1 %v462_v55 }
 0x17c   :  { %467 = vmatprep.subr.bf16.mxu1 %v466_v56 }
 0x17f   :  { %469 = vmatpush3.bf16.msra.mxu1 %v466_v56 }
 0x182   :  { %436 = vmatmul.mubr.msk.f32.vlgmr.msra.gmra.mrb[0].mxu1 %vm51_vm2, %v262_v57 }
 0x255   :  { %v437_v9 = vpop.f32.mrb[0].mxu1 }
 0x256   :  { %345 = vst.msk [vmem:[#allocation2 + $0x8] sm:$0xff] %vm51_vm2, %v437_v9  ;;  %v335_v58 = vpop.f32.mrb[1].mxu1 }
 0x257   :  { %344 = vst.msk [vmem:[#allocation2] sm:$0xff] %vm51_vm2, %v335_v58 }
 0x258   :  { %494 = shalt.err (!%p491_p4)
}
 0x259   :  { %s495_s15 = scalar_lea.hbm %s688_s5, 256 }
 0x25a   :  { %p496_p5 = scmp.ne.s32.totalorder %s688_s5, %s495_s15  ;;  %p499_p6 = scmp.lt.u32.totalorder %s495_s15, %s688_s5 }
 0x25c   :  { %p501_p7 = pnand %p499_p6, %p496_p5 }
 0x25e   :  { %504 = shalt.err (!%p501_p7)
}
 0x25f   :  { %s510_s20 = smov 128   ;;  %s511_s21 = smov 8  }
 0x260   :  { %357 = dma.vmem_to_hbm [thread:$0]  %s352_s12, 256, %s688_s5, [#allocation3], %s510_s20, %s510_s20, %s511_s21  }
 0x261   :  { %505 = dma.done.wait [#allocation3], 256  }
 0x262   :  { %506 = vsyncadd [#allocation3], 4294967040 }
 0x263   :  { %361 = vsyncpa [#allocation3], 1 }

</bundles_post_ra>
